<compile_context>
chip_gen: v5e
topology: v5e:2x2
jax: 0.10.0
libtpu: 0.0.40
codegen_flags: <defaults>
</compile_context>

<pallas_src>
import functools

import jax
import jax.numpy as jnp
from jax.experimental import pallas as pl
from jax.experimental.pallas import tpu as pltpu

_LANE = 128
_SUBLANE = 8


def _round_up(x, m):
    return ((x + m - 1) // m) * m


def _mlp_kernel(x_ref, w1_ref, b1_ref, w2_ref, b2_ref, o_ref, *,
                compute_dtype, precision):
    # Cast activations to the matmul operand dtype in-kernel (free under DMA).
    x = x_ref[...].astype(compute_dtype)
    # Linear1: (tb, In) @ (In, Hp) -> f32 accumulate on the MXU
    h = jnp.dot(x, w1_ref[...], preferred_element_type=jnp.float32,
                precision=precision)
    h = jnp.maximum(h + b1_ref[...], 0.0)          # bias + ReLU in f32
    # Dropout(p=0.25): identity at inference (eval) time.
    # Linear2: (tb, Hp) @ (Hp, Out) -> f32 accumulate
    y = jnp.dot(h.astype(compute_dtype), w2_ref[...],
                preferred_element_type=jnp.float32, precision=precision)
    o_ref[...] = (y + b2_ref[...]).astype(o_ref.dtype)


def prepare_kappa_params(w1, b1, w2, b2, *, compute_dtype=jnp.bfloat16):
    """One-time parameter prep (hoisted out of the per-call path).

    w1: (In, Hid), b1: (Hid,) or (1, Hid)  -- linear1, weight pre-transposed
    w2: (Hid, Out), b2: (Out,) or (1, Out) -- linear2, weight pre-transposed

    The hidden dim is zero-padded to a multiple of 128 so the intermediate h
    is lane-dense; the padding is mathematically inert (ReLU(0+0)=0 and the
    matching w2 rows are zero). The HBM-facing output keeps the true Out.
    """
    In, Hid = w1.shape
    Out = w2.shape[1]
    Hp = _round_up(Hid, _LANE)
    w1p = jnp.zeros((In, Hp), compute_dtype).at[:, :Hid].set(
        w1.astype(compute_dtype))
    b1p = jnp.zeros((1, Hp), jnp.float32).at[:, :Hid].set(
        jnp.reshape(b1, (1, Hid)).astype(jnp.float32))
    w2p = jnp.zeros((Hp, Out), compute_dtype).at[:Hid, :].set(
        w2.astype(compute_dtype))
    b2p = jnp.reshape(b2, (1, Out)).astype(jnp.float32)
    return w1p, b1p, w2p, b2p


def learn_kappa_layers1_forward(x, params, *, tb=None, out_dtype=None):
    """Forward pass. x: (B, In); params from prepare_kappa_params()."""
    w1p, b1p, w2p, b2p = params
    B, In = x.shape
    Hp = w1p.shape[1]
    Out = w2p.shape[1]
    compute_dtype = w1p.dtype
    out_dtype = x.dtype if out_dtype is None else out_dtype

    # Batch tiling: big tiles amortize the ~0.35us per-step overhead; >=2
    # balanced steps for medium/large batches so both v7x TensorCores work.
    if tb is None:
        if B < 1024:
            tb = _round_up(B, _SUBLANE)               # single step
        elif B <= 4096:
            tb = _round_up(pl.cdiv(B, 2), _SUBLANE)   # 2 balanced steps
        else:
            tb = 2048                                 # large cap, many steps
    else:
        tb = _round_up(tb, _SUBLANE)
    tb = max(_SUBLANE, min(tb, _round_up(B, _SUBLANE)))

    # Pallas clips the partial last block; rows are independent so undefined
    # tail-row inputs never influence a kept output row.
    grid = (pl.cdiv(B, tb),)

    isz = lambda dt: jnp.dtype(dt).itemsize
    cost = pl.CostEstimate(
        flops=2 * B * (In * Hp + Hp * Out),
        transcendentals=0,
        bytes_accessed=(B * In * isz(x.dtype)
                        + B * Out * isz(out_dtype)
                        + (w1p.size + w2p.size) * isz(compute_dtype)
                        + (b1p.size + b2p.size) * 4),
    )

    precision = (jax.lax.Precision.HIGHEST
                 if compute_dtype == jnp.float32 else None)
    kernel = functools.partial(_mlp_kernel, compute_dtype=compute_dtype,
                               precision=precision)

    return pl.pallas_call(
        kernel,
        out_shape=jax.ShapeDtypeStruct((B, Out), out_dtype),
        grid_spec=pl.GridSpec(
            grid=grid,
            in_specs=[
                # batch-tiled activations (lane dim = In = full array extent)
                pl.BlockSpec((tb, In), lambda i: (i, 0)),
                # weights/biases: full arrays, constant index map -> stay
                # resident in VMEM across all grid steps (no re-DMA)
                pl.BlockSpec((In, Hp), lambda i: (0, 0)),
                pl.BlockSpec((1, Hp), lambda i: (0, 0)),
                pl.BlockSpec((Hp, Out), lambda i: (0, 0)),
                pl.BlockSpec((1, Out), lambda i: (0, 0)),
            ],
            # narrow output block: Out equals the full array extent, so the
            # (8,128) rule is satisfied and no wrapper-side slice is needed
            out_specs=pl.BlockSpec((tb, Out), lambda i: (i, 0)),
        ),
        compiler_params=pltpu.CompilerParams(
            dimension_semantics=("parallel",)),
        cost_estimate=cost,
    )(x, w1p, b1p, w2p, b2p)


def _torch_linear_init(key, fan_in, fan_out, dtype=jnp.float32):
    """Deterministic init mimicking nn.Linear: U(-1/sqrt(fan_in), +1/sqrt(fan_in))."""
    kw, kb = jax.random.split(key)
    bound = 1.0 / jnp.sqrt(jnp.asarray(fan_in, dtype))
    # stored as (in_features, out_features) so the kernel computes x @ W
    w = jax.random.uniform(kw, (fan_in, fan_out), dtype, -bound, bound)
    b = jax.random.uniform(kb, (1, fan_out), dtype, -bound, bound)
    return w, b


def reference_forward(x, w1, b1, w2, b2):
    h = jnp.maximum(x @ w1 + b1, 0.0)
    return h @ w2 + b2


if __name__ == "__main__":
    # Shapes consistent with the module: In_nodes=32, Hid=64, Out_nodes=16
    In_nodes, Hid, Out_nodes = 32, 64, 16

    key = jax.random.PRNGKey(0)
    kx, k1, k2, kx2 = jax.random.split(key, 4)

    w1, b1 = _torch_linear_init(k1, In_nodes, Hid)
    w2, b2 = _torch_linear_init(k2, Hid, Out_nodes)

    # --- exact-ish f32 operand path, small batch, single-step grid ----------
    B = 8
    x = jax.random.normal(kx, (B, In_nodes), jnp.float32)
    params_f32 = prepare_kappa_params(w1, b1, w2, b2,
                                      compute_dtype=jnp.float32)
    y_f32 = jax.block_until_ready(learn_kappa_layers1_forward(x, params_f32))
    y_ref = reference_forward(x, w1, b1, w2, b2)
    assert y_f32.shape == (B, Out_nodes)
    assert jnp.allclose(y_f32, y_ref, atol=1e-4, rtol=1e-4)

    # --- default bf16 operand path (f32 accumulate) --------------------------
    params_bf16 = prepare_kappa_params(w1, b1, w2, b2)
    y_bf16 = jax.block_until_ready(learn_kappa_layers1_forward(x, params_bf16))
    assert y_bf16.shape == (B, Out_nodes)
    assert jnp.allclose(y_bf16, y_ref, atol=3e-2, rtol=3e-2)

    # --- non-divisible batch: multi-step grid with a clipped last block -----
    B2 = 300
    x2 = jax.random.normal(kx2, (B2, In_nodes), jnp.float32)
    y2 = jax.block_until_ready(
        learn_kappa_layers1_forward(x2, params_bf16, tb=128))
    y2_ref = reference_forward(x2, w1, b1, w2, b2)
    assert y2.shape == (B2, Out_nodes)
    assert jnp.allclose(y2, y2_ref, atol=3e-2, rtol=3e-2)

    print("KERNEL_OK")
</pallas_src>

<mosaic_0001>
module attributes {stable_mosaic.version = 11 : i64} {
  func.func @_mlp_kernel(%arg0: i32, %arg1: memref<8x32xf32, #tpu.memory_space<vmem>>, %arg2: memref<32x128xf32, #tpu.memory_space<vmem>>, %arg3: memref<1x128xf32, #tpu.memory_space<vmem>>, %arg4: memref<128x16xf32, #tpu.memory_space<vmem>>, %arg5: memref<1x16xf32, #tpu.memory_space<vmem>>, %arg6: memref<8x16xf32, #tpu.memory_space<vmem>>) attributes {dimension_semantics = [#tpu.dimension_semantics<parallel>], iteration_bounds = array<i64: 1>, scalar_prefetch = 0 : i64, scratch_operands = 0 : i64, tpu.core_type = #tpu.core_type<tc>, window_params = [{transform_indices = @transform_0, window_bounds = array<i64: 8, 32>}, {pipeline_mode = #tpu.pipeline_mode<synchronous>, transform_indices = @transform_1, window_bounds = array<i64: 32, 128>}, {pipeline_mode = #tpu.pipeline_mode<synchronous>, transform_indices = @transform_2, window_bounds = array<i64: 1, 128>}, {pipeline_mode = #tpu.pipeline_mode<synchronous>, transform_indices = @transform_3, window_bounds = array<i64: 128, 16>}, {pipeline_mode = #tpu.pipeline_mode<synchronous>, transform_indices = @transform_4, window_bounds = array<i64: 1, 16>}, {transform_indices = @transform_5, window_bounds = array<i64: 8, 16>}]} {
    %c0 = arith.constant 0 : index
    %c0_0 = arith.constant 0 : index
    %0 = vector.load %arg1[%c0, %c0_0] : memref<8x32xf32, #tpu.memory_space<vmem>>, vector<8x32xf32>
    %c0_1 = arith.constant 0 : index
    %c0_2 = arith.constant 0 : index
    %1 = vector.load %arg2[%c0_1, %c0_2] : memref<32x128xf32, #tpu.memory_space<vmem>>, vector<32x128xf32>
    %cst = arith.constant dense<0.000000e+00> : vector<8x128xf32>
    %2 = tpu.matmul %0, %1, %cst {dimension_numbers = #tpu.dot_dimension_numbers<[1], [0], [0], [1], [0, 0, 1, 1], [], []>, precision = #tpu.contract_precision<fp32>} : vector<8x32xf32>, vector<32x128xf32>, vector<8x128xf32> -> vector<8x128xf32>
    %c0_3 = arith.constant 0 : index
    %c0_4 = arith.constant 0 : index
    %3 = vector.load %arg3[%c0_3, %c0_4] : memref<1x128xf32, #tpu.memory_space<vmem>>, vector<1x128xf32>
    %4 = vector.broadcast %3 : vector<1x128xf32> to vector<8x128xf32>
    %5 = arith.addf %2, %4 : vector<8x128xf32>
    %cst_5 = arith.constant 0.000000e+00 : f32
    %6 = vector.broadcast %cst_5 : f32 to vector<8x128xf32>
    %7 = arith.maximumf %5, %6 : vector<8x128xf32>
    %c0_6 = arith.constant 0 : index
    %c0_7 = arith.constant 0 : index
    %8 = vector.load %arg4[%c0_6, %c0_7] : memref<128x16xf32, #tpu.memory_space<vmem>>, vector<128x16xf32>
    %cst_8 = arith.constant dense<0.000000e+00> : vector<8x16xf32>
    %9 = tpu.matmul %7, %8, %cst_8 {dimension_numbers = #tpu.dot_dimension_numbers<[1], [0], [0], [1], [0, 0, 1, 1], [], []>, precision = #tpu.contract_precision<fp32>} : vector<8x128xf32>, vector<128x16xf32>, vector<8x16xf32> -> vector<8x16xf32>
    %c0_9 = arith.constant 0 : index
    %c0_10 = arith.constant 0 : index
    %10 = vector.load %arg5[%c0_9, %c0_10] : memref<1x16xf32, #tpu.memory_space<vmem>>, vector<1x16xf32>
    %11 = vector.broadcast %10 : vector<1x16xf32> to vector<8x16xf32>
    %12 = arith.addf %9, %11 : vector<8x16xf32>
    %c0_11 = arith.constant 0 : index
    %c0_12 = arith.constant 0 : index
    %13 = vector.load %arg6[%c0_11, %c0_12] : memref<8x16xf32, #tpu.memory_space<vmem>>, vector<8x16xf32>
    tpu.vector_store %arg6[%c0_11, %c0_12], %12 {strides = array<i32>} : memref<8x16xf32, #tpu.memory_space<vmem>>, vector<8x16xf32>,
    return
  }
  func.func @transform_0(%arg0: i32) -> (i32, i32) {
    %c0_i32 = arith.constant 0 : i32
    %c0_i32_0 = arith.constant 0 : i32
    return %arg0, %c0_i32 : i32, i32
  }
  func.func @transform_1(%arg0: i32) -> (i32, i32) {
    %c0_i32 = arith.constant 0 : i32
    %c0_i32_0 = arith.constant 0 : i32
    %c0_i32_1 = arith.constant 0 : i32
    return %c0_i32, %c0_i32_0 : i32, i32
  }
  func.func @transform_2(%arg0: i32) -> (i32, i32) {
    %c0_i32 = arith.constant 0 : i32
    %c0_i32_0 = arith.constant 0 : i32
    %c0_i32_1 = arith.constant 0 : i32
    return %c0_i32, %c0_i32_0 : i32, i32
  }
  func.func @transform_3(%arg0: i32) -> (i32, i32) {
    %c0_i32 = arith.constant 0 : i32
    %c0_i32_0 = arith.constant 0 : i32
    %c0_i32_1 = arith.constant 0 : i32
    return %c0_i32, %c0_i32_0 : i32, i32
  }
  func.func @transform_4(%arg0: i32) -> (i32, i32) {
    %c0_i32 = arith.constant 0 : i32
    %c0_i32_0 = arith.constant 0 : i32
    %c0_i32_1 = arith.constant 0 : i32
    return %c0_i32, %c0_i32_0 : i32, i32
  }
  func.func @transform_5(%arg0: i32) -> (i32, i32) {
    %c0_i32 = arith.constant 0 : i32
    %c0_i32_0 = arith.constant 0 : i32
    return %arg0, %c0_i32 : i32, i32
  }
}

</mosaic_0001>

<bundles_post_ra>
// kernel: tpu_custom_call.1
= control target key start
LH: loop header
LB: loop body
LE: loop exit
PB: predicated region body
PF: predicated region fallthrough
CT: control target
= control target key end

     0   :  { %vm30_vm0 = vcmask 261120   ;;  %s1001_s0 = inlined_call_operand.vmem [shape: f32[8,32], index: 0, kind: input, shape index: {}]   ;;  %s1002_s1 = inlined_call_operand.vmem [shape: f32[32,128], index: 1, kind: input, shape index: {}]   ;;  %s1003_s2 = inlined_call_operand.vmem [shape: f32[1,128], index: 2, kind: input, shape index: {}]   ;;  %s1004_s3 = inlined_call_operand.vmem [shape: f32[128,16], index: 3, kind: input, shape index: {}]   ;;  %s1005_s4 = inlined_call_operand.vmem [shape: f32[1,16], index: 4, kind: input, shape index: {}]   ;;  %s1006_s5 = inlined_call_operand.hbm [shape: f32[8,16], index: 5, kind: output, shape index: {}]  }
   0x1   :  { %v25_v0 = vld [vmem:[%s1002_s1 + $0x18] sm:$0xff]  ;;  %v24_v1 = vld [vmem:[%s1002_s1 + $0x10] sm:$0xff]  ;;  %v23_v2 = vld [vmem:[%s1002_s1 + $0x8] sm:$0xff] }
   0x2   :  { %v668_v3 = vand.u32 4294901760, %v25_v0  ;;  %v670_v4 = vand.u32 4294901760, %v24_v1  ;;  %v672_v5 = vand.u32 4294901760, %v23_v2  ;;  %v22_v6 = vld [vmem:[%s1002_s1] sm:$0xff]  ;;  %v235_v10 = vld [vmem:[%s1004_s3 + $0x78] sm:$0xff]  ;;  %v234_v11 = vld [vmem:[%s1004_s3 + $0x70] sm:$0xff] }
   0x3   :  { %v21_v7 = vld [vmem:[%s1001_s0] sm:$0xff]  ;;  %v680_v8 = vand.u32 4294901760, %v22_v6  ;;  %v233_v12 = vld [vmem:[%s1004_s3 + $0x68] sm:$0xff]  ;;  %v706_v18 = vand.u32 4294901760, %v235_v10  ;;  %v708_v19 = vand.u32 4294901760, %v234_v11 }
   0x4   :  { %v32_v9 = vsel %vm30_vm0, %v21_v7, 0  ;;  %47 = vmatpush.msra.mxu0 %v668_v3  ;;  %v693_v13 = vsub.f32 %v25_v0, %v668_v3  ;;  %v698_v15 = vsub.f32 %v24_v1, %v670_v4  ;;  %v701_v16 = vsub.f32 %v23_v2, %v672_v5 }
   0x5   :  { %v695_v14 = vand.u32 4294901760, %v32_v9  ;;  %v704_v17 = vsub.f32 %v22_v6, %v680_v8  ;;  %v710_v20 = vand.u32 4294901760, %v233_v12  ;;  %v721_v26 = vsub.f32 %v235_v10, %v706_v18  ;;  %241 = vmatpush.msra.mxu2 %v706_v18 }
   0x6   :  { %49 = vmatpush.msra.mxu0 %v670_v4  ;;  %v77_v21 = vand.u32 4294901760, %v693_v13  ;;  %v83_v23 = vand.u32 4294901760, %v698_v15  ;;  %v89_v24 = vand.u32 4294901760, %v701_v16  ;;  %v724_v27 = vsub.f32 %v234_v11, %v708_v19 }
   0x7   :  { %v715_v22 = vsub.f32 %v32_v9, %v695_v14  ;;  %v95_v25 = vand.u32 4294901760, %v704_v17  ;;  %v727_v28 = vsub.f32 %v233_v12, %v710_v20 }
   0x8   :  { %51 = vmatpush.msra.mxu0 %v672_v5  ;;  %v78_v29 = vsub.f32 %v693_v13, %v77_v21  ;;  %v84_v31 = vsub.f32 %v698_v15, %v83_v23  ;;  %v90_v32 = vsub.f32 %v701_v16, %v89_v24 }
   0x9   :  { %v56_v30 = vand.u32 4294901760, %v715_v22 }
   0xa   :  { %10 = vsyncpa [#allocation3], 0  ;;  %v96_v33 = vsub.f32 %v704_v17, %v95_v25  ;;  %v283_v34 = vand.u32 4294901760, %v721_v26  ;;  %v289_v35 = vand.u32 4294901760, %v724_v27  ;;  %v295_v36 = vand.u32 4294901760, %v727_v28  ;;  %v232_v37 = vld [vmem:[%s1004_s3 + $0x60] sm:$0xff]  ;;  %243 = vmatpush.msra.mxu2 %v708_v19  ;;  %53 = vmatpush.msra.mxu0 %v680_v8 }
   0xb   :  { %v231_v38 = vld [vmem:[%s1004_s3 + $0x58] sm:$0xff]  ;;  %v230_v39 = vld [vmem:[%s1004_s3 + $0x50] sm:$0xff]  ;;  %v79_v40 = vand.u32 4294901760, %v78_v29  ;;  %v57_v41 = vsub.f32 %v715_v22, %v56_v30  ;;  %v85_v42 = vand.u32 4294901760, %v84_v31  ;;  %v229_v43 = vld [vmem:[%s1004_s3 + $0x48] sm:$0xff]  ;;  %v91_v44 = vand.u32 4294901760, %v90_v32 }
   0xc   :  { %118 = vmatpush.msrb.mxu0 %v693_v13  ;;  %v284_v45 = vsub.f32 %v721_v26, %v283_v34  ;;  %v290_v46 = vsub.f32 %v724_v27, %v289_v35  ;;  %v296_v47 = vsub.f32 %v727_v28, %v295_v36  ;;  %245 = vmatpush.msra.mxu2 %v710_v20  ;;  %v228_v48 = vld [vmem:[%s1004_s3 + $0x40] sm:$0xff]  ;;  %v778_v50 = vand.u32 4294901760, %v232_v37  ;;  %v227_v53 = vld [vmem:[%s1004_s3 + $0x38] sm:$0xff]  ;;  %v226_v54 = vld [vmem:[%s1004_s3 + $0x30] sm:$0xff]  ;;  %s628_s1 = smov [#allocation2]   ;;  %s590_s12 = sshll.u32 %s1006_s5, 4  ;;  %s591_s12 = int_to_ptr.hbm [resolvable:$true] %s590_s12 }
   0xd   :  { %80 = vmatpush.msra.mxu1 %v79_v40  ;;  %v58_v49 = vand.u32 4294901760, %v57_v41  ;;  %v780_v51 = vand.u32 4294901760, %v231_v38  ;;  %v782_v52 = vand.u32 4294901760, %v230_v39  ;;  %v97_v55 = vand.u32 4294901760, %v96_v33  ;;  %v225_v63 = vld [vmem:[%s1004_s3 + $0x28] sm:$0xff]  ;;  %s588_s9 = sshll.u32 %s628_s1, 4  ;;  %s589_s9 = int_to_ptr.vmem [resolvable:$true] %s588_s9 }
   0xe   :  { %121 = vmatpush.msrb.mxu0 %v698_v15  ;;  %v285_v56 = vand.u32 4294901760, %v284_v45  ;;  %v291_v57 = vand.u32 4294901760, %v290_v46  ;;  %v791_v58 = vand.u32 4294901760, %v229_v43  ;;  %v794_v59 = vsub.f32 %v232_v37, %v778_v50  ;;  %247 = vmatpush.msra.mxu2 %v778_v50 }
   0xf   :  { %59 = vmatmul.f32.vlgmr.msra.gmra.mxu0 %v58_v49  ;;  %86 = vmatpush.msra.mxu1 %v85_v42  ;;  %v797_v60 = vsub.f32 %v231_v38, %v780_v51  ;;  %v800_v61 = vsub.f32 %v230_v39, %v782_v52  ;;  %v802_v62 = vand.u32 4294901760, %v228_v48  ;;  %v297_v0 = vand.u32 4294901760, %v296_v47  ;;  %v223_v39 = vld [vmem:[%s1004_s3 + $0x18] sm:$0xff] }
  0x10   :  { %124 = vmatpush.msrb.mxu0 %v701_v16  ;;  %286 = vmatpush.msra.mxu3 %v285_v56  ;;  %v809_v1 = vsub.f32 %v229_v43, %v791_v58  ;;  %v811_v2 = vand.u32 4294901760, %v227_v53  ;;  %v813_v6 = vand.u32 4294901760, %v226_v54  ;;  %v301_v7 = vand.u32 4294901760, %v794_v59 }
  0x11   :  { %92 = vmatpush.msra.mxu1 %v91_v44  ;;  %v307_v9 = vand.u32 4294901760, %v797_v60  ;;  %v313_v10 = vand.u32 4294901760, %v800_v61  ;;  %v820_v11 = vsub.f32 %v228_v48, %v802_v62  ;;  %v827_v31 = vand.u32 4294901760, %v225_v63  ;;  %249 = vmatpush.msra.mxu2 %v780_v51 }
  0x12   :  { %127 = vmatpush.msrb.mxu0 %v704_v17  ;;  %292 = vmatpush.msra.mxu3 %v291_v57  ;;  %v319_v12 = vand.u32 4294901760, %v809_v1  ;;  %v825_v29 = vsub.f32 %v227_v53, %v811_v2  ;;  %v302_v32 = vsub.f32 %v794_v59, %v301_v7  ;;  %v843_v13 = vsub.f32 %v226_v54, %v813_v6 }
  0x13   :  { %98 = vmatpush.msra.mxu1 %v97_v55  ;;  %v308_v33 = vsub.f32 %v797_v60, %v307_v9  ;;  %v314_v37 = vsub.f32 %v800_v61, %v313_v10  ;;  %v325_v38 = vand.u32 4294901760, %v820_v11  ;;  %v860_v44 = vsub.f32 %v225_v63, %v827_v31  ;;  %251 = vmatpush.msra.mxu2 %v782_v52 }
  0x14   :  { %176 = vmatpush.msra.mxu0 %v77_v21  ;;  %100 = vmatmul.f32.vlgmr.msra.gmra.mxu1 %v695_v14  ;;  %v224_v21 = vld [vmem:[%s1004_s3 + $0x20] sm:$0xff]  ;;  %v303_v40 = vand.u32 4294901760, %v302_v32  ;;  %v320_v42 = vsub.f32 %v809_v1, %v319_v12  ;;  %v331_v43 = vand.u32 4294901760, %v825_v29  ;;  %v866_v15 = vand.u32 4294901760, %v223_v39 }
  0x15   :  { %298 = vmatpush.msra.mxu3 %v297_v0  ;;  %147 = vmatpush.msrb.mxu1 %v668_v3  ;;  %v309_v41 = vand.u32 4294901760, %v308_v33  ;;  %v864_v45 = vand.u32 4294901760, %v224_v21  ;;  %v326_v46 = vsub.f32 %v820_v11, %v325_v38  ;;  %v337_v47 = vand.u32 4294901760, %v843_v13  ;;  %v221_v0 = vld [vmem:[%s1004_s3 + $0x8] sm:$0xff] }
  0x16   :  { %180 = vmatpush.msra.mxu0 %v83_v23  ;;  %v315_v23 = vand.u32 4294901760, %v314_v37  ;;  %v321_v16 = vand.u32 4294901760, %v320_v42  ;;  %v343_v49 = vand.u32 4294901760, %v860_v44  ;;  %v886_v53 = vsub.f32 %v223_v39, %v866_v15  ;;  %253 = vmatpush.msra.mxu2 %v791_v58  ;;  %v220_v37 = vld [vmem:[%s1004_s3] sm:$0xff] }
  0x17   :  { %130 = vmatmul.f32.vlgmr.msrb.gmra.mxu0 %v715_v22  ;;  %149 = vmatpush.msrb.mxu1 %v670_v4  ;;  %v877_v48 = vsub.f32 %v224_v21, %v864_v45  ;;  %v327_v17 = vand.u32 4294901760, %v326_v46  ;;  %v268_v33 = vand.u32 4294901760, %v221_v0  ;;  %vm581_vm1 = vcmask 130048  }
  0x18   :  { %184 = vmatpush.msra.mxu0 %v89_v24  ;;  %304 = vmatpush.msra.mxu3 %v303_v40  ;;  %v332_v24 = vsub.f32 %v825_v29, %v331_v43  ;;  %v344_v56 = vsub.f32 %v860_v44, %v343_v49  ;;  %v355_v22 = vand.u32 4294901760, %v886_v53  ;;  %v270_v40 = vand.u32 4294901760, %v220_v37 }
  0x19   :  { %151 = vmatpush.msrb.mxu1 %v672_v5  ;;  %v349_v54 = vand.u32 4294901760, %v877_v48  ;;  %255 = vmatpush.msra.mxu2 %v802_v62  ;;  %v366_v39 = vsub.f32 %v221_v0, %v268_v33 }
  0x1a   :  { %188 = vmatpush.msra.mxu0 %v95_v25  ;;  %310 = vmatpush.msra.mxu3 %v309_v41  ;;  %v338_v25 = vsub.f32 %v843_v13, %v337_v47  ;;  %v333_v55 = vand.u32 4294901760, %v332_v24  ;;  %v345_v57 = vand.u32 4294901760, %v344_v56  ;;  %v356_v63 = vsub.f32 %v886_v53, %v355_v22 }
  0x1b   :  { %153 = vmatpush.msrb.mxu1 %v680_v8  ;;  %257 = vmatpush.msra.mxu2 %v811_v2  ;;  %v367_v42 = vand.u32 4294901760, %v366_v39 }
  0x1c   :  { %157 = vmatmul.f32.vlgmr.msrb.gmra.mxu1 %v56_v30  ;;  %316 = vmatpush.msra.mxu3 %v315_v23  ;;  %v339_v30 = vand.u32 4294901760, %v338_v25  ;;  %v372_v23 = vsub.f32 %v220_v37, %v270_v40 }
  0x1d   :  { %207 = vmatpush.msra.mxu1 %v668_v3  ;;  %384 = vmatpush.msrb.mxu0 %v721_v26  ;;  %v350_v3 = vsub.f32 %v877_v48, %v349_v54 }
  0x1e   :  { %322 = vmatpush.msra.mxu3 %v321_v16  ;;  %259 = vmatpush.msra.mxu2 %v813_v6  ;;  %v368_v16 = vsub.f32 %v366_v39, %v367_v42  ;;  %v373_v24 = vand.u32 4294901760, %v372_v23 }
  0x1f   :  { %190 = vmatmul.f32.vlgmr.msra.gmra.mxu0 %v695_v14  ;;  %209 = vmatpush.msra.mxu1 %v670_v4  ;;  %v351_v4 = vand.u32 4294901760, %v350_v3 }
  0x20   :  { %328 = vmatpush.msra.mxu3 %v327_v17  ;;  %387 = vmatpush.msrb.mxu0 %v724_v27  ;;  %v369_v17 = vand.u32 4294901760, %v368_v16  ;;  %v374_v25 = vsub.f32 %v372_v23, %v373_v24 }
  0x21   :  { %211 = vmatpush.msra.mxu1 %v672_v5  ;;  %261 = vmatpush.msra.mxu2 %v827_v31  ;;  %v357_v5 = vand.u32 4294901760, %v356_v63 }
  0x22   :  { %334 = vmatpush.msra.mxu3 %v333_v55  ;;  %390 = vmatpush.msrb.mxu0 %v727_v28  ;;  %v375_v55 = vand.u32 4294901760, %v374_v25 }
  0x23   :  { %213 = vmatpush.msra.mxu1 %v680_v8  ;;  %263 = vmatpush.msra.mxu2 %v864_v45  ;;  %v222_v8 = vld [vmem:[%s1004_s3 + $0x10] sm:$0xff] }
  0x24   :  { %215 = vmatmul.f32.vlgmr.msra.gmra.mxu1 %v695_v14  ;;  %340 = vmatpush.msra.mxu3 %v339_v30  ;;  %v266_v14 = vand.u32 4294901760, %v222_v8 }
  0x25   :  { %437 = vmatpush.msrb.mxu1 %v706_v18  ;;  %393 = vmatpush.msrb.mxu0 %v794_v59 }
  0x26   :  { %346 = vmatpush.msra.mxu3 %v345_v57  ;;  %265 = vmatpush.msra.mxu2 %v866_v15  ;;  %v360_v32 = vsub.f32 %v222_v8, %v266_v14 }
  0x27   :  { %439 = vmatpush.msrb.mxu1 %v708_v19  ;;  %396 = vmatpush.msrb.mxu0 %v797_v60 }
  0x28   :  { %352 = vmatpush.msra.mxu3 %v351_v4  ;;  %267 = vmatpush.msra.mxu2 %v266_v14  ;;  %v361_v21 = vand.u32 4294901760, %v360_v32 }
  0x29   :  { %441 = vmatpush.msrb.mxu1 %v710_v20  ;;  %399 = vmatpush.msrb.mxu0 %v800_v61 }
  0x2a   :  { %358 = vmatpush.msra.mxu3 %v357_v5  ;;  %269 = vmatpush.msra.mxu2 %v268_v33  ;;  %v362_v41 = vsub.f32 %v360_v32, %v361_v21 }
  0x2b   :  { %443 = vmatpush.msrb.mxu1 %v778_v50  ;;  %402 = vmatpush.msrb.mxu0 %v809_v1 }
  0x2c   :  { %271 = vmatpush.msra.mxu2 %v270_v40  ;;  %v363_v46 = vand.u32 4294901760, %v362_v41 }
  0x2d   :  { %445 = vmatpush.msrb.mxu1 %v780_v51  ;;  %405 = vmatpush.msrb.mxu0 %v820_v11 }
  0x2e   :  { %478 = vmatpush.msrb.mxu2 %v283_v34  ;;  %364 = vmatpush.msra.mxu3 %v363_v46 }
  0x2f   :  { %447 = vmatpush.msrb.mxu1 %v782_v52  ;;  %408 = vmatpush.msrb.mxu0 %v825_v29 }
  0x30   :  { %482 = vmatpush.msrb.mxu2 %v289_v35  ;;  %370 = vmatpush.msra.mxu3 %v369_v17 }
  0x31   :  { %449 = vmatpush.msrb.mxu1 %v791_v58  ;;  %411 = vmatpush.msrb.mxu0 %v843_v13 }
  0x32   :  { %486 = vmatpush.msrb.mxu2 %v295_v36  ;;  %376 = vmatpush.msra.mxu3 %v375_v55 }
  0x33   :  { %451 = vmatpush.msrb.mxu1 %v802_v62  ;;  %414 = vmatpush.msrb.mxu0 %v860_v44 }
  0x34   :  { %490 = vmatpush.msrb.mxu2 %v301_v7  ;;  %545 = vmatpush.msrb.mxu3 %v706_v18 }
  0x35   :  { %453 = vmatpush.msrb.mxu1 %v811_v2  ;;  %417 = vmatpush.msrb.mxu0 %v877_v48 }
  0x36   :  { %494 = vmatpush.msrb.mxu2 %v307_v9  ;;  %547 = vmatpush.msrb.mxu3 %v708_v19  ;;  %v600_v19 = vld [vmem:[%s1003_s2] ss:$0 sm:$0xff] }
  0x37   :  { %455 = vmatpush.msrb.mxu1 %v813_v6  ;;  %420 = vmatpush.msrb.mxu0 %v886_v53 }
  0x38   :  { %498 = vmatpush.msrb.mxu2 %v313_v10  ;;  %549 = vmatpush.msrb.mxu3 %v710_v20 }
  0x39   :  { %457 = vmatpush.msrb.mxu1 %v827_v31  ;;  %423 = vmatpush.msrb.mxu0 %v360_v32 }
  0x3a   :  { %502 = vmatpush.msrb.mxu2 %v319_v12  ;;  %551 = vmatpush.msrb.mxu3 %v778_v50 }
  0x3b   :  { %459 = vmatpush.msrb.mxu1 %v864_v45  ;;  %426 = vmatpush.msrb.mxu0 %v366_v39 }
  0x3c   :  { %506 = vmatpush.msrb.mxu2 %v325_v38  ;;  %553 = vmatpush.msrb.mxu3 %v780_v51 }
  0x3d   :  { %461 = vmatpush.msrb.mxu1 %v866_v15  ;;  %429 = vmatpush.msrb.mxu0 %v372_v23 }
  0x3e   :  { %510 = vmatpush.msrb.mxu2 %v331_v43  ;;  %555 = vmatpush.msrb.mxu3 %v782_v52 }
  0x3f   :  { %463 = vmatpush.msrb.mxu1 %v266_v14 }
  0x40   :  { %514 = vmatpush.msrb.mxu2 %v337_v47  ;;  %557 = vmatpush.msrb.mxu3 %v791_v58 }
  0x41   :  { %465 = vmatpush.msrb.mxu1 %v268_v33 }
  0x42   :  { %518 = vmatpush.msrb.mxu2 %v343_v49  ;;  %559 = vmatpush.msrb.mxu3 %v802_v62 }
  0x43   :  { %467 = vmatpush.msrb.mxu1 %v270_v40 }
  0x44   :  { %522 = vmatpush.msrb.mxu2 %v349_v54  ;;  %561 = vmatpush.msrb.mxu3 %v811_v2 }
  0x46   :  { %526 = vmatpush.msrb.mxu2 %v355_v22  ;;  %563 = vmatpush.msrb.mxu3 %v813_v6  ;;  %v601_v6 = vld [vmem:[%s1005_s4] ss:$0 sm:$0xff] }
  0x48   :  { %530 = vmatpush.msrb.mxu2 %v361_v21  ;;  %565 = vmatpush.msrb.mxu3 %v827_v31 }
  0x4a   :  { %534 = vmatpush.msrb.mxu2 %v367_v42  ;;  %567 = vmatpush.msrb.mxu3 %v864_v45 }
  0x4c   :  { %538 = vmatpush.msrb.mxu2 %v373_v24  ;;  %569 = vmatpush.msrb.mxu3 %v866_v15 }
  0x4e   :  { %571 = vmatpush.msrb.mxu3 %v266_v14 }
  0x50   :  { %573 = vmatpush.msrb.mxu3 %v268_v33 }
  0x52   :  { %575 = vmatpush.msrb.mxu3 %v270_v40 }
  0x8c   :  { %v60_v18 = vpop.f32.mrf.mxu0 }
  0x8d   :  { %v61_v26 = vadd.f32 %v600_v19, %v60_v18 }
  0x91   :  { %v101_v20 = vpop.f32.mrf.mxu1 }
  0x92   :  { %v102_v28 = vadd.f32 %v101_v20, %v61_v26 }
  0x94   :  { %v131_v27 = vpop.f32.mrf.mxu0 }
  0x95   :  { %v132_v35 = vadd.f32 %v131_v27, %v102_v28 }
  0x99   :  { %v158_v34 = vpop.f32.mrf.mxu1 }
  0x9a   :  { %v159_v36 = vadd.f32 %v158_v34, %v132_v35 }
  0x9c   :  { %v191_v50 = vpop.f32.mrf.mxu0 }
  0x9d   :  { %v192_v51 = vadd.f32 %v191_v50, %v159_v36 }
  0xa1   :  { %v216_v52 = vpop.f32.mrf.mxu1 }
  0xa2   :  { %v217_v58 = vadd.f32 %v216_v52, %v192_v51 }
  0xa4   :  { %v219_v59 = vmax.f32 %v217_v58, 0.0 }
  0xa6   :  { %v272_v60 = vand.u32 4294901760, %v219_v59 }
  0xa8   :  { %v273_v61 = vsub.f32 %v219_v59, %v272_v60  ;;  %378 = vmatmul.f32.vlgmr.msra.gmra.mxu3 %v272_v60 }
  0xaa   :  { %432 = vmatmul.f32.vlgmr.msrb.gmra.mxu0 %v273_v61  ;;  %v274_v62 = vand.u32 4294901760, %v273_v61 }
  0xac   :  { %471 = vmatmul.f32.vlgmr.msrb.gmra.mxu1 %v274_v62  ;;  %v275_v1 = vsub.f32 %v273_v61, %v274_v62 }
  0xae   :  { %v276_v2 = vand.u32 4294901760, %v275_v1 }
  0xb0   :  { %277 = vmatmul.f32.vlgmr.msra.gmra.mxu2 %v276_v2  ;;  %577 = vmatmul.f32.vlgmr.msrb.gmra.mxu3 %v272_v60 }
  0xb8   :  { %540 = vmatmul.f32.vlgmr.msrb.gmra.mxu2 %v272_v60 }
 0x127   :  { %v433_v12 = vpop.f32.mrf.mxu0 }
 0x129   :  { %v472_v31 = vpop.f32.mrf.mxu1 }
 0x12b   :  { %v379_v7 = vpop.f32.mrf.mxu3 }
 0x133   :  { %v278_v9 = vpop.f32.mrf.mxu2  ;;  %v578_v44 = vpop.f32.mrf.mxu3 }
 0x134   :  { %v279_v10 = vadd.f32 %v601_v6, %v278_v9 }
 0x136   :  { %v380_v11 = vadd.f32 %v379_v7, %v279_v10 }
 0x138   :  { %v434_v29 = vadd.f32 %v433_v12, %v380_v11 }
 0x13a   :  { %v473_v38 = vadd.f32 %v472_v31, %v434_v29 }
 0x13b   :  { %v541_v13 = vpop.f32.mrf.mxu2 }
 0x13c   :  { %v542_v43 = vadd.f32 %v541_v13, %v473_v38 }
 0x13e   :  { %v579_v45 = vadd.f32 %v578_v44, %v542_v43 }
 0x140   :  { %582 = vst.msk [vmem:[#allocation2] sm:$0xff] %vm581_vm1, %v579_v45 }
 0x141   :  { %593 = dma.vmem_to_hbm [thread:$0]  %s589_s9, 128, %s591_s12, [#allocation3]  }
 0x142   :  { %626 = dma.done.wait [#allocation3], 128  }
 0x143   :  { %627 = vsyncadd [#allocation3], 4294967168 }
 0x144   :  { %598 = vsyncpa [#allocation3], 1 }

</bundles_post_ra>
